<compile_context>
chip_gen: v6e
topology: v6e:2x2x1
jax: 0.10.0
libtpu: 0.0.40
codegen_flags: <defaults>
</compile_context>

<pallas_src>
import functools

import jax
import jax.numpy as jnp
from jax import lax
from jax.experimental import pallas as pl
from jax.experimental.pallas import tpu as pltpu


def _round_up(x, m):
    return (x + m - 1) // m * m


def _conv_block_kernel(a_ref, w_ref, shift_ref, alpha_ref, o_ref, *, activation):
    """One M-tile: (tm, Kc) x (Kc, Cp) bf16 GEMM -> f32, + shift, + activation.

    Cp is a multiple of 128 (lane-dense), so the store is an unmasked vst.
    """
    acc = jnp.dot(a_ref[...], w_ref[...], preferred_element_type=jnp.float32)
    y = acc + shift_ref[...]                      # broadcast (1, Cp), f32 epilogue
    if activation == 'prelu':
        # scalar alpha read from SMEM (nn.PReLU() default num_parameters=1)
        y = jnp.where(y > 0, y, alpha_ref[0] * y)
    elif activation == 'leakyrelu':
        y = jnp.where(y > 0, y, 0.2 * y)
    elif activation == 'tanh':
        y = jnp.tanh(y)
    o_ref[...] = y.astype(o_ref.dtype)


def conv_block_forward(x_nchw, weight_oihw, bias, *, stride=1, batch_norm=False,
                       bn_params=None, activation=None, prelu_alpha=0.25):
    """Forward of ConvolutionalBlock. Input/output are NCHW like the PyTorch module."""
    n, c_in, h, w = x_nchw.shape
    c_out, _, k, _ = weight_oihw.shape
    pad = k // 2
    h_out = (h + 2 * pad - k) // stride + 1
    w_out = (w + 2 * pad - k) // stride + 1

    # ---- glue (plain JAX): layout, im2col, parameter folding -----------------
    x_nhwc = jnp.transpose(x_nchw, (0, 2, 3, 1)).astype(jnp.float32)
    x_pad = jnp.pad(x_nhwc, ((0, 0), (pad, pad), (pad, pad), (0, 0)))

    taps = []
    for kh in range(k):
        for kw in range(k):
            taps.append(x_pad[:, kh:kh + stride * (h_out - 1) + 1:stride,
                              kw:kw + stride * (w_out - 1) + 1:stride, :])
    kc = k * k * c_in
    m = n * h_out * w_out
    # (N, Hout, Wout, K*K*Cin) -> (M, Kc); patch order is [kh, kw, cin]
    a_mat = jnp.concatenate(taps, axis=-1).reshape(m, kc)

    # weights -> (Kc, Cout) in the same [kh, kw, cin] order
    w_mat = jnp.transpose(weight_oihw, (2, 3, 1, 0)).astype(jnp.float32)
    w_mat = w_mat.reshape(kc, c_out)

    if batch_norm:
        gamma, beta, mean, var, eps = bn_params        # eval-mode BatchNorm2d
        scale = gamma / jnp.sqrt(var + eps)
        shift = (bias - mean) * scale + beta
    else:
        scale = jnp.ones((c_out,), jnp.float32)
        shift = bias.astype(jnp.float32)
    # TODO(synk): training-mode BatchNorm (running-stat updates) not implemented.
    w_mat = w_mat * scale[None, :]                     # fold BN scale into weights

    # ---- padding / tiling -----------------------------------------------------
    c_pad = _round_up(c_out, 128)                      # lane-dense output slab
    tm = min(256, _round_up(max(pl.cdiv(m, 2), 8), 8))  # keep >=2 grid steps (v7x TCs)
    m_pad = _round_up(m, tm)

    a_mat = jnp.pad(a_mat, ((0, m_pad - m), (0, 0))).astype(jnp.bfloat16)
    w_mat = jnp.pad(w_mat, ((0, 0), (0, c_pad - c_out))).astype(jnp.bfloat16)
    shift_row = jnp.pad(shift.reshape(1, c_out).astype(jnp.float32),
                        ((0, 0), (0, c_pad - c_out)))
    alpha = jnp.asarray([prelu_alpha], jnp.float32)

    kernel = functools.partial(_conv_block_kernel, activation=activation)

    out = pl.pallas_call(
        kernel,
        out_shape=jax.ShapeDtypeStruct((m_pad, c_pad), jnp.float32),
        grid=(m_pad // tm,),
        in_specs=[
            pl.BlockSpec((tm, kc), lambda i: (i, 0)),
            # constant index_maps -> weight & shift blocks stay VMEM-resident
            pl.BlockSpec((kc, c_pad), lambda i: (0, 0)),
            pl.BlockSpec((1, c_pad), lambda i: (0, 0)),
            pl.BlockSpec(memory_space=pltpu.MemorySpace.SMEM),   # scalar alpha
        ],
        out_specs=pl.BlockSpec((tm, c_pad), lambda i: (i, 0)),
        compiler_params=pltpu.CompilerParams(
            dimension_semantics=("parallel",)),
        # NOTE: blocks here are tiny (<1 MiB total); for large images, tile H
        # with a halo and set vmem_limit_bytes explicitly (v7x has 64 MiB VMEM).
    )(a_mat, w_mat, shift_row, alpha)

    out = out[:m, :c_out].reshape(n, h_out, w_out, c_out)
    return jnp.transpose(out, (0, 3, 1, 2))            # back to NCHW


def _reference(x, w, b, bn_params, activation, prelu_alpha, *, stride=1,
               compute_dtype=jnp.float32):
    """Pure-JAX reference (lax conv). compute_dtype=bf16 matches kernel precision."""
    k = w.shape[-1]
    pad = k // 2
    if bn_params is not None:
        gamma, beta, mean, var, eps = bn_params
        scale = gamma / jnp.sqrt(var + eps)
        shift = (b - mean) * scale + beta
        w_eff = w * scale[:, None, None, None]
    else:
        w_eff, shift = w, b
    y = lax.conv_general_dilated(
        x.astype(compute_dtype), w_eff.astype(compute_dtype),
        window_strides=(stride, stride), padding=[(pad, pad), (pad, pad)],
        dimension_numbers=('NCHW', 'OIHW', 'NCHW'),
        preferred_element_type=jnp.float32)
    y = y + shift[None, :, None, None].astype(jnp.float32)
    if activation == 'prelu':
        y = jnp.where(y > 0, y, prelu_alpha * y)
    elif activation == 'leakyrelu':
        y = jnp.where(y > 0, y, 0.2 * y)
    elif activation == 'tanh':
        y = jnp.tanh(y)
    return y


if __name__ == "__main__":
    # Module config: ConvolutionalBlock(4, 8, kernel_size=3, stride=1,
    #                                   batch_norm=True, activation='prelu')
    N, C_IN, C_OUT, H, W, K = 2, 4, 8, 16, 16, 3

    key = jax.random.PRNGKey(0)
    kx, kw_, kb, kg, kbe, km, kv = jax.random.split(key, 7)

    x = jax.random.normal(kx, (N, C_IN, H, W), jnp.float32)
    weight = jax.random.normal(kw_, (C_OUT, C_IN, K, K), jnp.float32) * 0.1
    bias = jax.random.normal(kb, (C_OUT,), jnp.float32) * 0.1

    # Deterministic eval-mode BatchNorm parameters (gamma, beta, running stats).
    gamma = jax.random.uniform(kg, (C_OUT,), jnp.float32, 0.5, 1.5)
    beta = jax.random.normal(kbe, (C_OUT,), jnp.float32) * 0.1
    run_mean = jax.random.normal(km, (C_OUT,), jnp.float32) * 0.1
    run_var = jax.random.uniform(kv, (C_OUT,), jnp.float32, 0.5, 1.5)
    bn_params = (gamma, beta, run_mean, run_var, 1e-5)
    prelu_alpha = 0.25   # nn.PReLU() default init (num_parameters=1)

    out = conv_block_forward(x, weight, bias, stride=1, batch_norm=True,
                             bn_params=bn_params, activation='prelu',
                             prelu_alpha=prelu_alpha)
    out = jax.block_until_ready(out)
    assert out.shape == (N, C_OUT, H, W)

    # Tight check vs a precision-matched (bf16-input, f32-accum) reference.
    ref_bf16 = _reference(x, weight, bias, bn_params, 'prelu', prelu_alpha,
                          stride=1, compute_dtype=jnp.bfloat16)
    assert jnp.allclose(out, ref_bf16, rtol=2e-3, atol=2e-3), \
        f"max err vs bf16 ref {jnp.max(jnp.abs(out - ref_bf16))}"

    # Sanity check vs the pure-f32 module reference (loose: bf16 MXU inputs).
    ref_f32 = _reference(x, weight, bias, bn_params, 'prelu', prelu_alpha,
                         stride=1, compute_dtype=jnp.float32)
    assert jnp.allclose(out, ref_f32, rtol=5e-2, atol=5e-2), \
        f"max err vs f32 ref {jnp.max(jnp.abs(out - ref_f32))}"

    # stride=2 + tanh path (supported via strided im2col in the wrapper).
    out_s2 = conv_block_forward(x, weight, bias, stride=2, batch_norm=False,
                                bn_params=None, activation='tanh')
    out_s2 = jax.block_until_ready(out_s2)
    ref_s2 = _reference(x, weight, bias, None, 'tanh', prelu_alpha,
                        stride=2, compute_dtype=jnp.float32)
    assert out_s2.shape == ref_s2.shape
    assert jnp.allclose(out_s2, ref_s2, rtol=5e-2, atol=5e-2), \
        f"max err stride=2 {jnp.max(jnp.abs(out_s2 - ref_s2))}"

    print("KERNEL_OK")
</pallas_src>

<mosaic_0001>
module attributes {stable_mosaic.version = 11 : i64} {
  func.func @_conv_block_kernel(%arg0: i32, %arg1: memref<256x36xbf16, #tpu.memory_space<vmem>>, %arg2: memref<36x128xbf16, #tpu.memory_space<vmem>>, %arg3: memref<1x128xf32, #tpu.memory_space<vmem>>, %arg4: memref<1xf32, #tpu.memory_space<smem>>, %arg5: memref<256x128xf32, #tpu.memory_space<vmem>>) attributes {dimension_semantics = [#tpu.dimension_semantics<parallel>], iteration_bounds = array<i64: 2>, scalar_prefetch = 0 : i64, scratch_operands = 0 : i64, tpu.core_type = #tpu.core_type<tc>, window_params = [{transform_indices = @transform_0, window_bounds = array<i64: 256, 36>}, {pipeline_mode = #tpu.pipeline_mode<synchronous>, transform_indices = @transform_1, window_bounds = array<i64: 36, 128>}, {pipeline_mode = #tpu.pipeline_mode<synchronous>, transform_indices = @transform_2, window_bounds = array<i64: 1, 128>}, {transform_indices = @transform_3, window_bounds = array<i64: 1>}, {transform_indices = @transform_4, window_bounds = array<i64: 256, 128>}]} {
    %c0 = arith.constant 0 : index
    %c0_0 = arith.constant 0 : index
    %0 = vector.load %arg1[%c0, %c0_0] : memref<256x36xbf16, #tpu.memory_space<vmem>>, vector<256x36xbf16>
    %c0_1 = arith.constant 0 : index
    %c0_2 = arith.constant 0 : index
    %1 = vector.load %arg2[%c0_1, %c0_2] : memref<36x128xbf16, #tpu.memory_space<vmem>>, vector<36x128xbf16>
    %cst = arith.constant dense<0.000000e+00> : vector<256x128xf32>
    %2 = tpu.matmul %0, %1, %cst {dimension_numbers = #tpu.dot_dimension_numbers<[1], [0], [0], [1], [0, 0, 1, 1], [], []>} : vector<256x36xbf16>, vector<36x128xbf16>, vector<256x128xf32> -> vector<256x128xf32>
    %c0_3 = arith.constant 0 : index
    %c0_4 = arith.constant 0 : index
    %3 = vector.load %arg3[%c0_3, %c0_4] : memref<1x128xf32, #tpu.memory_space<vmem>>, vector<1x128xf32>
    %4 = vector.broadcast %3 : vector<1x128xf32> to vector<256x128xf32>
    %5 = arith.addf %2, %4 : vector<256x128xf32>
    %cst_5 = arith.constant 0.000000e+00 : f32
    %6 = vector.broadcast %cst_5 : f32 to vector<256x128xf32>
    %7 = arith.cmpf ogt, %5, %6 : vector<256x128xf32>
    %c0_6 = arith.constant 0 : index
    %8 = memref.load %arg4[%c0_6] : memref<1xf32, #tpu.memory_space<smem>>
    %9 = vector.broadcast %8 : f32 to vector<256x128xf32>
    %10 = arith.mulf %9, %5 : vector<256x128xf32>
    %11 = arith.select %7, %5, %10 : vector<256x128xi1>, vector<256x128xf32>
    %c0_7 = arith.constant 0 : index
    %c0_8 = arith.constant 0 : index
    %12 = vector.load %arg5[%c0_7, %c0_8] : memref<256x128xf32, #tpu.memory_space<vmem>>, vector<256x128xf32>
    tpu.vector_store %arg5[%c0_7, %c0_8], %11 {strides = array<i32>} : memref<256x128xf32, #tpu.memory_space<vmem>>, vector<256x128xf32>,
    return
  }
  func.func @transform_0(%arg0: i32) -> (i32, i32) {
    %c0_i32 = arith.constant 0 : i32
    %c0_i32_0 = arith.constant 0 : i32
    return %arg0, %c0_i32 : i32, i32
  }
  func.func @transform_1(%arg0: i32) -> (i32, i32) {
    %c0_i32 = arith.constant 0 : i32
    %c0_i32_0 = arith.constant 0 : i32
    %c0_i32_1 = arith.constant 0 : i32
    return %c0_i32, %c0_i32_0 : i32, i32
  }
  func.func @transform_2(%arg0: i32) -> (i32, i32) {
    %c0_i32 = arith.constant 0 : i32
    %c0_i32_0 = arith.constant 0 : i32
    %c0_i32_1 = arith.constant 0 : i32
    return %c0_i32, %c0_i32_0 : i32, i32
  }
  func.func @transform_3(%arg0: i32) -> i32 {
    %c0_i32 = arith.constant 0 : i32
    %c0_i32_0 = arith.constant 0 : i32
    return %c0_i32 : i32
  }
  func.func @transform_4(%arg0: i32) -> (i32, i32) {
    %c0_i32 = arith.constant 0 : i32
    %c0_i32_0 = arith.constant 0 : i32
    return %arg0, %c0_i32 : i32, i32
  }
}

</mosaic_0001>

<bundles_post_ra>
// kernel: tpu_custom_call.1
= control target key start
LH: loop header
LB: loop body
LE: loop exit
PB: predicated region body
PF: predicated region fallthrough
CT: control target
= control target key end

     0   :  { %s1281_s0 = inlined_call_operand.vmem [shape: bf16[512,36], index: 0, kind: input, shape index: {}]   ;;  %s1282_s1 = inlined_call_operand.vmem [shape: bf16[36,128], index: 1, kind: input, shape index: {}]   ;;  %s1283_s2 = inlined_call_operand.vmem [shape: f32[1,128], index: 2, kind: input, shape index: {}]   ;;  %s1284_s3 = inlined_call_operand.<no memory space> [shape: f32[1], index: 3, kind: input, shape index: {}]   ;;  %s1285_s4 = inlined_call_operand.hbm [shape: f32[512,128], index: 4, kind: output, shape index: {}]  }
   0x1   :  { %9 = sst [smem:[#allocation2]] %s1284_s3 }
   0x2   :  { %10 = vsyncpa [#allocation4], 0 }
   0x3   :  { %12 = vsyncpa [#allocation4 + $0x1], 0  ;;  %s1027_s17 = smov 0   ;;  %s1029_s18 = smov 0  }
   0x4   :  { %s1031_s19 = smov 0   ;;  %s1033_s20 = smov 0  }
   0x5 LB: > { %s1048_s3 = sadd.s32 4294967295, %s994_s20   ;;  %s760_s21 = sadd.s32 4294967294, %s994_s20   ;;  %s994_s20 = sphi %s1033_s20, %s1291_s20   ;;  %s990_s19 = sphi %s1031_s19, %s1290_s19   ;;  %s986_s18 = sphi %s1029_s18, %s1289_s18   ;;  %s982_s17 = sphi %s1027_s17, %s1288_s17  }
   0x6   : > { %s1052_s22 = sadd.s32 1, %s994_s20   ;;  %s114_s23 = sadd.s32 1, %s990_s19 }
   0x7   : > { %s111_s24 = ssub.s32 %s994_s20, %s1052_s22  ;;  %p124_p0 = scmp.ne.s32.totalorder %s990_s19, %s986_s18 }
   0x8   : > { %p112_p1 = scmp.eq.s32.totalorder %s111_s24, 0  ;;  %p125_p2 = scmp.eq.s32.totalorder %s1048_s3, 1 }
   0x9   : > { %p130_p3 = scmp.ne.s32.totalorder %s986_s18, %s982_s17  ;;  %p131_p4 = scmp.eq.s32.totalorder %s760_s21, 1 }
   0xa   : > { %s1063_s25 = scalar_select %p112_p1, %s990_s19, %s114_s23  }
   0xb   : > { %p1065_p5 = por %p125_p2, %p124_p0  ;;  %p1069_p6 = por %p131_p4, %p130_p3 }
   0xc   : > { %p763_p7 = scmp.ge.s32.totalorder %s994_s20, 1  ;;  %p167_p8 = scmp.lt.s32.totalorder %s994_s20, 3 }
   0xe   : > { %p168_p9 = pnand %p763_p7, %p167_p8 }
   0xf   : > { %s765_s6 = sshll.u32 (!%p168_p9), %s1048_s3, 5  ;;  %s586_s13 = sld [smem:[#allocation2]] (!%p168_p9) }
  0x10   : > { %171 = sbr.rel (%p168_p9) target bundleno = 278 (0x116), region = 36  ;;  %p194_p10 = scmp.lt.s32.totalorder (!%p168_p9), %s765_s6, 63 }
  0x11   : > { %s190_s14 = sand.u32 (!%p168_p9), 1, %s986_s18   ;;  %s808_s24 = sshll.u32 (!%p168_p9), %s1048_s3, 12 }
  0x12   : > { %s764_s21 = sshll.u32 (!%p168_p9), %s190_s14, 8  ;;  %s1233_s30 = scalar_lea.hbm (!%p168_p9), %s1285_s4, %s808_s24 }
  0x13   : > { %s1140_s23 = scalar_lea.vmem (!%p168_p9), [#allocation3], %s764_s21  ;;  %s1241_s5 = scalar_lea.sflag (!%p168_p9), [#allocation4], %s190_s14 }
  0x14   : > { %s698_s28 = sshll.u32 (!%p168_p9), %s1140_s23, 4  ;;  %s996_s7 = smov (!%p168_p9), [#allocation3]   ;;  %s1235_s28 = int_to_ptr.vmem [resolvable:$true] %s698_s28 }
  0x15   : > { %v915_v0 = vld [vmem:[%s1282_s1 + $0x10] ss:$0 sps:$4 sm:$0x33]   ;;  %vm389_vm0 = vcmask 1041408   ;;  %v916_v1 = vld [vmem:[%s1282_s1 + $0x8] sm:$0xff]   ;;  %v917_v3 = vld [vmem:[%s1282_s1] sm:$0xff]   ;;  %v1130_v22 = vstv %s586_s13 }
  0x16   : > { %872 = vmatprep.subr.msk.bf16.mxu0 %vm389_vm0, %v915_v0  ;;  %873 = vmatprep.subr.msk.bf16.mxu1 %vm389_vm0, %v915_v0  ;;  %v391_v2 = vsel %vm389_vm0, %v915_v0, 0  ;;  %s1293_s6 = smov (!%p194_p10, %s765_s6), 63  ;;  %vm340_vm1 = vcmask 293888   ;;  %v1126_v20 = vld [vmem:[%s1283_s2] ss:$0 sm:$0xff]  ;;  %s938_s8 = sshll.u32 %s996_s7, 4  ;;  %s939_s8 = int_to_ptr.vmem [resolvable:$false] %s938_s8 }
  0x17   : > { %829 = vmatpush3.bf16.msra.mxu0 %v391_v2  ;;  %869 = vmatpush3.bf16.msra.mxu1 %v391_v2  ;;  %s766_s9 = sshll.u32 %s1293_s6, 2  ;;  %s934_s6 = scalar_lea.vmem %s1235_s28, 4096 }
  0x18   : > { %830 = vmatprep.subr.bf16.mxu0 %v916_v1  ;;  %867 = vmatprep.subr.bf16.mxu1 %v916_v1  ;;  %s1088_s12 = scalar_lea.vmem %s1281_s0, %s766_s9  ;;  %p935_p11 = scmp.ne.s32.totalorder %s1235_s28, %s934_s6 }
  0x19   : > { %v918_v4 = vld [vmem:[%s1088_s12] sm:$0xff]   ;;  %v920_v6 = vld [vmem:[%s1088_s12 + $0x8] sm:$0xff]   ;;  %v922_v8 = vld [vmem:[%s1088_s12 + $0x10] sm:$0xff]   ;;  %s940_s9 = scalar_lea.vmem %s939_s8, 8192  ;;  %p941_p0 = scmp.lt.s32.totalorder %s1235_s28, %s939_s8 }
  0x1a   : > { %v919_v5 = vld [vmem:[%s1088_s12 + $0x40] sm:$0xff]   ;;  %834 = vmatprep.mubr.msk.bf16.mxu0 %vm340_vm1, %v918_v4  ;;  %v921_v7 = vld [vmem:[%s1088_s12 + $0x48] sm:$0xff]   ;;  %v923_v9 = vld [vmem:[%s1088_s12 + $0x50] sm:$0xff]   ;;  %p936_p12 = pnand %p935_p11, %p1065_p5  ;;  %p942_p1 = scmp.lt.s32.totalorder %s940_s9, %s934_s6 }
  0x1b   : > { %831 = vmatpush3.bf16.msra.mxu0 %v916_v1  ;;  %870 = vmatpush3.bf16.msra.mxu1 %v916_v1  ;;  %v924_v10 = vld [vmem:[%s1088_s12 + $0x18] sm:$0xff]   ;;  %v926_v12 = vld [vmem:[%s1088_s12 + $0x20] sm:$0xff]   ;;  %v928_v14 = vld [vmem:[%s1088_s12 + $0x28] sm:$0xff]  }
  0x1c   : > { %832 = vmatprep.subr.bf16.mxu0 %v917_v3  ;;  %868 = vmatprep.subr.bf16.mxu1 %v917_v3  ;;  %v925_v11 = vld [vmem:[%s1088_s12 + $0x58] sm:$0xff]   ;;  %v927_v13 = vld [vmem:[%s1088_s12 + $0x60] sm:$0xff]   ;;  %v929_v15 = vld [vmem:[%s1088_s12 + $0x68] sm:$0xff]   ;;  %p937_p13 = pneg %p936_p12  ;;  %p943_p2 = por %p942_p1, %p941_p0 }
  0x1d   : > { %850 = vmatprep.mubr.msk.bf16.mxu1 %vm340_vm1, %v919_v5  ;;  %v930_v16 = vld [vmem:[%s1088_s12 + $0x30] sm:$0xff]   ;;  %v932_v18 = vld [vmem:[%s1088_s12 + $0x38] sm:$0xff]  }
  0x1e   : > { %v931_v17 = vld [vmem:[%s1088_s12 + $0x70] sm:$0xff]   ;;  %v933_v19 = vld [vmem:[%s1088_s12 + $0x78] sm:$0xff]   ;;  %p944_p3 = pnand %p943_p2, %p937_p13 }
  0x1f   : > { %833 = vmatpush3.bf16.msra.mxu0 %v917_v3  ;;  %871 = vmatpush3.bf16.msra.mxu1 %v917_v3 }
  0x22   : > { %835 = vmatmul.mubr.msk.bf16.vlgmr.msra.gmra.mxu0 %vm340_vm1, %v920_v6  ;;  %851 = vmatmul.mubr.msk.bf16.vlgmr.msra.gmra.mxu1 %vm340_vm1, %v921_v7 }
  0x23   : > { %838 = vmatprep.mubr.msk.bf16.mxu0 %vm340_vm1, %v922_v8  ;;  %854 = vmatprep.mubr.msk.bf16.mxu1 %vm340_vm1, %v923_v9 }
  0x2a   : > { %839 = vmatmul.mubr.msk.bf16.gmra.mxu0 %vm340_vm1, %v924_v10  ;;  %855 = vmatmul.mubr.msk.bf16.gmra.mxu1 %vm340_vm1, %v925_v11 }
  0x2b   : > { %842 = vmatprep.mubr.msk.bf16.mxu0 %vm340_vm1, %v926_v12  ;;  %858 = vmatprep.mubr.msk.bf16.mxu1 %vm340_vm1, %v927_v13 }
  0x32   : > { %843 = vmatmul.mubr.msk.bf16.gmra.mxu0 %vm340_vm1, %v928_v14  ;;  %859 = vmatmul.mubr.msk.bf16.gmra.mxu1 %vm340_vm1, %v929_v15 }
  0x33   : > { %846 = vmatprep.mubr.msk.bf16.mxu0 %vm340_vm1, %v930_v16  ;;  %862 = vmatprep.mubr.msk.bf16.mxu1 %vm340_vm1, %v931_v17 }
  0x3a   : > { %847 = vmatmul.mubr.msk.bf16.gmra.mxu0 %vm340_vm1, %v932_v18  ;;  %863 = vmatmul.mubr.msk.bf16.gmra.mxu1 %vm340_vm1, %v933_v19 }
  0xe2   : > { %v836_v21 = vpop.f32.mrf.mxu0  ;;  %v852_v23 = vpop.f32.mrf.mxu1 }
  0xe3   : > { %v436_v24 = vadd.f32 %v836_v21, %v1126_v20  ;;  %v500_v25 = vadd.f32 %v852_v23, %v1126_v20 }
  0xe4   : > { %v427_v26 = vpop.f32.mrf.mxu0  ;;  %v491_v27 = vpop.f32.mrf.mxu1 }
  0xe5   : > { %vm556_vm2 = vcmp.gt.f32.partialorder %v436_v24, 0.0  ;;  %v590_v28 = vmul.f32 %v1130_v22, %v436_v24  ;;  %vm572_vm3 = vcmp.gt.f32.partialorder %v500_v25, 0.0  ;;  %v606_v29 = vmul.f32 %v1130_v22, %v500_v25 }
  0xe6   : > { %v428_v30 = vadd.f32 %v1126_v20, %v427_v26  ;;  %v492_v31 = vadd.f32 %v1126_v20, %v491_v27  ;;  %v837_v32 = vpop.f32.mrf.mxu0  ;;  %v853_v33 = vpop.f32.mrf.mxu1 }
  0xe7   : > { %v622_v34 = vsel %vm556_vm2, %v436_v24, %v590_v28  ;;  %v638_v35 = vsel %vm572_vm3, %v500_v25, %v606_v29  ;;  %v439_v36 = vadd.f32 %v837_v32, %v1126_v20  ;;  %v503_v37 = vadd.f32 %v853_v33, %v1126_v20 }
  0xe8   : > { %654 = vst [vmem:[%s1140_s23 + $0x10] sm:$0xff] %v622_v34  ;;  %670 = vst [vmem:[%s1140_s23 + $0x90] sm:$0xff] %v638_v35  ;;  %vm554_vm4 = vcmp.gt.f32.partialorder %v428_v30, 0.0  ;;  %v588_v38 = vmul.f32 %v1130_v22, %v428_v30  ;;  %vm570_vm5 = vcmp.gt.f32.partialorder %v492_v31, 0.0  ;;  %v604_v39 = vmul.f32 %v1130_v22, %v492_v31  ;;  %v430_v40 = vpop.f32.mrf.mxu0  ;;  %v494_v41 = vpop.f32.mrf.mxu1 }
  0xe9   : > { %vm557_vm6 = vcmp.gt.f32.partialorder %v439_v36, 0.0  ;;  %v591_v42 = vmul.f32 %v1130_v22, %v439_v36  ;;  %vm573_vm7 = vcmp.gt.f32.partialorder %v503_v37, 0.0  ;;  %v607_v43 = vmul.f32 %v1130_v22, %v503_v37 }
  0xea   : > { %v620_v44 = vsel %vm554_vm4, %v428_v30, %v588_v38  ;;  %v636_v45 = vsel %vm570_vm5, %v492_v31, %v604_v39  ;;  %v431_v46 = vadd.f32 %v1126_v20, %v430_v40  ;;  %v495_v47 = vadd.f32 %v1126_v20, %v494_v41  ;;  %v840_v48 = vpop.f32.mrf.mxu0  ;;  %v856_v49 = vpop.f32.mrf.mxu1 }
  0xeb   : > { %652 = vst [vmem:[%s1140_s23] sm:$0xff] %v620_v44  ;;  %668 = vst [vmem:[%s1140_s23 + $0x80] sm:$0xff] %v636_v45  ;;  %v623_v50 = vsel %vm557_vm6, %v439_v36, %v591_v42  ;;  %v639_v51 = vsel %vm573_vm7, %v503_v37, %v607_v43  ;;  %v452_v52 = vadd.f32 %v840_v48, %v1126_v20 }
  0xec   : > { %v516_v53 = vadd.f32 %v856_v49, %v1126_v20  ;;  %655 = vst [vmem:[%s1140_s23 + $0x18] sm:$0xff] %v623_v50  ;;  %671 = vst [vmem:[%s1140_s23 + $0x98] sm:$0xff] %v639_v51  ;;  %vm555_vm8 = vcmp.gt.f32.partialorder %v431_v46, 0.0  ;;  %v589_v54 = vmul.f32 %v1130_v22, %v431_v46  ;;  %vm571_vm9 = vcmp.gt.f32.partialorder %v495_v47, 0.0  ;;  %v443_v56 = vpop.f32.mrf.mxu0  ;;  %v507_v57 = vpop.f32.mrf.mxu1 }
  0xed   : > { %v605_v55 = vmul.f32 %v1130_v22, %v495_v47  ;;  %vm560_vm10 = vcmp.gt.f32.partialorder %v452_v52, 0.0  ;;  %v594_v58 = vmul.f32 %v1130_v22, %v452_v52  ;;  %v444_v62 = vadd.f32 %v1126_v20, %v443_v56 }
  0xee   : > { %vm576_vm11 = vcmp.gt.f32.partialorder %v516_v53, 0.0  ;;  %v610_v59 = vmul.f32 %v1130_v22, %v516_v53  ;;  %v621_v60 = vsel %vm555_vm8, %v431_v46, %v589_v54  ;;  %v508_v63 = vadd.f32 %v1126_v20, %v507_v57  ;;  %v841_v0 = vpop.f32.mrf.mxu0  ;;  %v857_v1 = vpop.f32.mrf.mxu1 }
  0xef   : > { %v637_v61 = vsel %vm571_vm9, %v495_v47, %v605_v55  ;;  %653 = vst [vmem:[%s1140_s23 + $0x8] sm:$0xff] %v621_v60  ;;  %v626_v2 = vsel %vm560_vm10, %v452_v52, %v594_v58  ;;  %v455_v4 = vadd.f32 %v841_v0, %v1126_v20  ;;  %v519_v5 = vadd.f32 %v857_v1, %v1126_v20 }
  0xf0   : > { %669 = vst [vmem:[%s1140_s23 + $0x88] sm:$0xff] %v637_v61  ;;  %v642_v3 = vsel %vm576_vm11, %v516_v53, %v610_v59  ;;  %658 = vst [vmem:[%s1140_s23 + $0x30] sm:$0xff] %v626_v2  ;;  %vm558_vm12 = vcmp.gt.f32.partialorder %v444_v62, 0.0  ;;  %v592_v6 = vmul.f32 %v1130_v22, %v444_v62  ;;  %vm574_vm13 = vcmp.gt.f32.partialorder %v508_v63, 0.0  ;;  %v446_v8 = vpop.f32.mrf.mxu0  ;;  %v510_v9 = vpop.f32.mrf.mxu1 }
  0xf1   : > { %674 = vst [vmem:[%s1140_s23 + $0xb0] sm:$0xff] %v642_v3  ;;  %v608_v7 = vmul.f32 %v1130_v22, %v508_v63  ;;  %vm561_vm14 = vcmp.gt.f32.partialorder %v455_v4, 0.0  ;;  %v595_v10 = vmul.f32 %v1130_v22, %v455_v4  ;;  %vm577_vm15 = vcmp.gt.f32.partialorder %v519_v5, 0.0 }
  0xf2   : > { %v611_v11 = vmul.f32 %v1130_v22, %v519_v5  ;;  %v624_v12 = vsel %vm558_vm12, %v444_v62, %v592_v6  ;;  %v447_v14 = vadd.f32 %v1126_v20, %v446_v8  ;;  %v511_v15 = vadd.f32 %v1126_v20, %v510_v9  ;;  %v844_v16 = vpop.f32.mrf.mxu0  ;;  %v860_v17 = vpop.f32.mrf.mxu1 }
  0xf3   : > { %v640_v13 = vsel %vm574_vm13, %v508_v63, %v608_v7  ;;  %656 = vst [vmem:[%s1140_s23 + $0x20] sm:$0xff] %v624_v12  ;;  %v627_v18 = vsel %vm561_vm14, %v455_v4, %v595_v10  ;;  %v468_v21 = vadd.f32 %v844_v16, %v1126_v20  ;;  %v532_v23 = vadd.f32 %v860_v17, %v1126_v20 }
  0xf4   : > { %672 = vst [vmem:[%s1140_s23 + $0xa0] sm:$0xff] %v640_v13  ;;  %v643_v19 = vsel %vm577_vm15, %v519_v5, %v611_v11  ;;  %659 = vst [vmem:[%s1140_s23 + $0x38] sm:$0xff] %v627_v18  ;;  %vm559_vm0 = vcmp.gt.f32.partialorder %v447_v14, 0.0  ;;  %v593_v24 = vmul.f32 %v1130_v22, %v447_v14  ;;  %vm575_vm1 = vcmp.gt.f32.partialorder %v511_v15, 0.0  ;;  %v459_v26 = vpop.f32.mrf.mxu0  ;;  %v523_v27 = vpop.f32.mrf.mxu1 }
  0xf5   : > { %675 = vst [vmem:[%s1140_s23 + $0xb8] sm:$0xff] %v643_v19  ;;  %v609_v25 = vmul.f32 %v1130_v22, %v511_v15  ;;  %vm564_vm2 = vcmp.gt.f32.partialorder %v468_v21, 0.0  ;;  %v598_v28 = vmul.f32 %v1130_v22, %v468_v21  ;;  %vm580_vm3 = vcmp.gt.f32.partialorder %v532_v23, 0.0 }
  0xf6   : > { %v614_v29 = vmul.f32 %v1130_v22, %v532_v23  ;;  %v625_v30 = vsel %vm559_vm0, %v447_v14, %v593_v24  ;;  %v460_v32 = vadd.f32 %v1126_v20, %v459_v26  ;;  %v524_v33 = vadd.f32 %v1126_v20, %v523_v27  ;;  %v845_v34 = vpop.f32.mrf.mxu0  ;;  %v861_v35 = vpop.f32.mrf.mxu1 }
  0xf7   : > { %v641_v31 = vsel %vm575_vm1, %v511_v15, %v609_v25  ;;  %657 = vst [vmem:[%s1140_s23 + $0x28] sm:$0xff] %v625_v30  ;;  %v630_v36 = vsel %vm564_vm2, %v468_v21, %v598_v28  ;;  %v471_v38 = vadd.f32 %v845_v34, %v1126_v20  ;;  %v535_v39 = vadd.f32 %v861_v35, %v1126_v20 }
  0xf8   : > { %673 = vst [vmem:[%s1140_s23 + $0xa8] sm:$0xff] %v641_v31  ;;  %v646_v37 = vsel %vm580_vm3, %v532_v23, %v614_v29  ;;  %662 = vst [vmem:[%s1140_s23 + $0x50] sm:$0xff] %v630_v36  ;;  %vm562_vm4 = vcmp.gt.f32.partialorder %v460_v32, 0.0  ;;  %v596_v40 = vmul.f32 %v1130_v22, %v460_v32  ;;  %vm578_vm5 = vcmp.gt.f32.partialorder %v524_v33, 0.0  ;;  %v462_v42 = vpop.f32.mrf.mxu0  ;;  %v526_v43 = vpop.f32.mrf.mxu1 }
  0xf9   : > { %678 = vst [vmem:[%s1140_s23 + $0xd0] sm:$0xff] %v646_v37  ;;  %v612_v41 = vmul.f32 %v1130_v22, %v524_v33  ;;  %vm565_vm6 = vcmp.gt.f32.partialorder %v471_v38, 0.0  ;;  %v599_v44 = vmul.f32 %v1130_v22, %v471_v38  ;;  %vm581_vm7 = vcmp.gt.f32.partialorder %v535_v39, 0.0 }
  0xfa   : > { %v615_v45 = vmul.f32 %v1130_v22, %v535_v39  ;;  %v628_v46 = vsel %vm562_vm4, %v460_v32, %v596_v40  ;;  %v463_v48 = vadd.f32 %v1126_v20, %v462_v42  ;;  %v527_v49 = vadd.f32 %v1126_v20, %v526_v43  ;;  %v848_v50 = vpop.f32.mrf.mxu0  ;;  %v864_v51 = vpop.f32.mrf.mxu1 }
  0xfb   : > { %v644_v47 = vsel %vm578_vm5, %v524_v33, %v612_v41  ;;  %660 = vst [vmem:[%s1140_s23 + $0x40] sm:$0xff] %v628_v46  ;;  %v631_v52 = vsel %vm565_vm6, %v471_v38, %v599_v44  ;;  %v484_v54 = vadd.f32 %v848_v50, %v1126_v20  ;;  %v548_v55 = vadd.f32 %v864_v51, %v1126_v20 }
  0xfc   : > { %676 = vst [vmem:[%s1140_s23 + $0xc0] sm:$0xff] %v644_v47  ;;  %v647_v53 = vsel %vm581_vm7, %v535_v39, %v615_v45  ;;  %663 = vst [vmem:[%s1140_s23 + $0x58] sm:$0xff] %v631_v52  ;;  %vm563_vm8 = vcmp.gt.f32.partialorder %v463_v48, 0.0  ;;  %v597_v56 = vmul.f32 %v1130_v22, %v463_v48  ;;  %vm579_vm9 = vcmp.gt.f32.partialorder %v527_v49, 0.0  ;;  %v475_v58 = vpop.f32.mrf.mxu0  ;;  %v539_v59 = vpop.f32.mrf.mxu1 }
  0xfd   : > { %679 = vst [vmem:[%s1140_s23 + $0xd8] sm:$0xff] %v647_v53  ;;  %v613_v57 = vmul.f32 %v1130_v22, %v527_v49  ;;  %vm568_vm10 = vcmp.gt.f32.partialorder %v484_v54, 0.0  ;;  %v602_v60 = vmul.f32 %v1130_v22, %v484_v54  ;;  %vm584_vm11 = vcmp.gt.f32.partialorder %v548_v55, 0.0 }
  0xfe   : > { %v618_v61 = vmul.f32 %v1130_v22, %v548_v55  ;;  %v629_v62 = vsel %vm563_vm8, %v463_v48, %v597_v56  ;;  %v476_v0 = vadd.f32 %v1126_v20, %v475_v58  ;;  %v540_v1 = vadd.f32 %v1126_v20, %v539_v59  ;;  %v849_v2 = vpop.f32.mrf.mxu0  ;;  %v865_v3 = vpop.f32.mrf.mxu1 }
  0xff   : > { %v645_v63 = vsel %vm579_vm9, %v527_v49, %v613_v57  ;;  %661 = vst [vmem:[%s1140_s23 + $0x48] sm:$0xff] %v629_v62  ;;  %v634_v4 = vsel %vm568_vm10, %v484_v54, %v602_v60  ;;  %v487_v6 = vadd.f32 %v849_v2, %v1126_v20  ;;  %v551_v7 = vadd.f32 %v865_v3, %v1126_v20 }
 0x100   : > { %677 = vst [vmem:[%s1140_s23 + $0xc8] sm:$0xff] %v645_v63  ;;  %v650_v5 = vsel %vm584_vm11, %v548_v55, %v618_v61  ;;  %666 = vst [vmem:[%s1140_s23 + $0x70] sm:$0xff] %v634_v4  ;;  %vm566_vm12 = vcmp.gt.f32.partialorder %v476_v0, 0.0  ;;  %v600_v8 = vmul.f32 %v1130_v22, %v476_v0  ;;  %vm582_vm13 = vcmp.gt.f32.partialorder %v540_v1, 0.0  ;;  %v478_v10 = vpop.f32.mrf.mxu0  ;;  %v542_v11 = vpop.f32.mrf.mxu1 }
 0x101   : > { %682 = vst [vmem:[%s1140_s23 + $0xf0] sm:$0xff] %v650_v5  ;;  %v616_v9 = vmul.f32 %v1130_v22, %v540_v1  ;;  %vm569_vm14 = vcmp.gt.f32.partialorder %v487_v6, 0.0  ;;  %v603_v12 = vmul.f32 %v1130_v22, %v487_v6  ;;  %vm585_vm15 = vcmp.gt.f32.partialorder %v551_v7, 0.0 }
 0x102   : > { %v619_v13 = vmul.f32 %v1130_v22, %v551_v7  ;;  %v632_v14 = vsel %vm566_vm12, %v476_v0, %v600_v8  ;;  %v479_v16 = vadd.f32 %v1126_v20, %v478_v10  ;;  %v543_v17 = vadd.f32 %v1126_v20, %v542_v11 }
 0x103   : > { %v648_v15 = vsel %vm582_vm13, %v540_v1, %v616_v9  ;;  %664 = vst [vmem:[%s1140_s23 + $0x60] sm:$0xff] %v632_v14  ;;  %v635_v18 = vsel %vm569_vm14, %v487_v6, %v603_v12 }
 0x104   : > { %680 = vst [vmem:[%s1140_s23 + $0xe0] sm:$0xff] %v648_v15  ;;  %v651_v19 = vsel %vm585_vm15, %v551_v7, %v619_v13  ;;  %667 = vst [vmem:[%s1140_s23 + $0x78] sm:$0xff] %v635_v18  ;;  %vm567_vm0 = vcmp.gt.f32.partialorder %v479_v16, 0.0  ;;  %v601_v21 = vmul.f32 %v1130_v22, %v479_v16  ;;  %vm583_vm1 = vcmp.gt.f32.partialorder %v543_v17, 0.0 }
 0x105   : > { %683 = vst [vmem:[%s1140_s23 + $0xf8] sm:$0xff] %v651_v19  ;;  %v617_v23 = vmul.f32 %v1130_v22, %v543_v17 }
 0x106   : > { %v633_v20 = vsel %vm567_vm0, %v479_v16, %v601_v21 }
 0x107   : > { %v649_v24 = vsel %vm583_vm1, %v543_v17, %v617_v23  ;;  %665 = vst [vmem:[%s1140_s23 + $0x68] sm:$0xff] %v633_v20 }
 0x108   : > { %681 = vst [vmem:[%s1140_s23 + $0xe8] sm:$0xff] %v649_v24 }
 0x109   : > { %947 = shalt.err (!%p944_p3)
}
 0x10a   : > { %s948_s10 = scalar_lea.hbm %s1233_s30, 4096  ;;  %s952_s13 = scalar_lea.hbm %s1285_s4, 8192 }
 0x10b   : > { %p949_p4 = scmp.ne.s32.totalorder %s1233_s30, %s948_s10  ;;  %p953_p9 = scmp.lt.s32.totalorder %s1233_s30, %s1285_s4 }
 0x10c   : > { %p954_p10 = scmp.lt.s32.totalorder %s952_s13, %s948_s10 }
 0x10d   : > { %p950_p7 = pnand %p949_p4, %p1065_p5 }
 0x10e   : > { %p955_p11 = por %p954_p10, %p953_p9 }
 0x10f   : > { %p951_p8 = pneg %p950_p7 }
 0x111   : > { %p956_p12 = pnand %p955_p11, %p951_p8 }
 0x113   : > { %959 = shalt.err (!%p956_p12)
}
 0x114   : > { %s997_s16 = smov 128   ;;  %s998_s21 = smov 8  }
 0x115   : > { %874 = dma.vmem_to_hbm [thread:$0]  (%p1065_p5), %s1235_s28, 4096, %s1233_s30, %s1241_s5, %s997_s16, %s997_s16, %s998_s21  }
 0x116 PF: > { %p880_p13 = scmp.ge.s32.totalorder %s994_s20, 2  ;;  %s713_s23 = sand.u32 1, %s982_s17  }
 0x117   : > { %s714_s24 = scalar_lea.sflag [#allocation4], %s713_s23 }
 0x118   : > { %p877_p0 = pnand %p880_p13, %p1069_p6 }
 0x11a   : > { %p878_p1 = pneg %p877_p0 }
 0x11c   : > { %977 = dma.done.wait (%p878_p1), %s714_s24, 4096  }
 0x11d   : > { %979 = vsyncadd (%p878_p1), %s714_s24, 4294963200  ;;  %p15_p2 = scmp.ge.s32.totalorder %s1052_s22, 4   ;;  %s1288_s17 = smov %s986_s18 }
 0x11e   : > { %s1289_s18 = smov %s990_s19  ;;  %s1290_s19 = smov %s1063_s25 }
 0x11f   : > { %s1291_s20 = smov %s1052_s22  ;;  %17 = sbr.rel (!%p15_p2) target bundleno = 5 (0x5), region = 71 }
 0x124   :  { %719 = vsyncpa [#allocation4], 1 }
 0x125   :  { %721 = vsyncpa [#allocation4 + $0x1], 1 }

</bundles_post_ra>
